<compile_context>
chip_gen: v6e
topology: v6e:2x2x1
jax: 0.10.0
libtpu: 0.0.40
codegen_flags: <defaults>
</compile_context>

<pallas_src>
import functools
import math

import jax
import jax.numpy as jnp
from jax.experimental import pallas as pl
from jax.experimental.pallas import tpu as pltpu


def _pe_add_kernel(x_ref, o_ref, *, d_model: int):
    """x_ref / o_ref: (block_s, B*D) lane-dense tiles of the (S, B*D) view."""
    block_s, bd = x_ref.shape

    # Channel index for every lane: columns are B contiguous copies of D channels.
    col = jax.lax.broadcasted_iota(jnp.int32, (1, bd), 1)
    d = col % d_model                                   # channel index in [0, D)
    d_even = d - (d & 1)                                # 2 * (d // 2), no int div
    # div_term for channel d: exp(-(2*(d//2)) * ln(10000) / d_model)
    freq = jnp.exp(d_even.astype(jnp.float32) * (-math.log(10000.0) / d_model))
    is_even = (d & 1) == 0                              # (1, B*D)

    # Absolute sequence position of every row in this block.
    row = (jax.lax.broadcasted_iota(jnp.int32, (block_s, 1), 0)
           + pl.program_id(0) * block_s)                # (block_s, 1)
    angle = row.astype(jnp.float32) * freq              # (block_s, B*D)

    # sin/cos on the EUP slot — effectively free in this mem-bound kernel.
    pe = jnp.where(is_even, jnp.sin(angle), jnp.cos(angle))
    o_ref[...] = (x_ref[...].astype(jnp.float32) + pe).astype(o_ref.dtype)


def _choose_block_s(S: int, lane_width: int, dtype_bytes: int,
                    block_budget_bytes: int = 4 * 1024 * 1024) -> int:
    """Largest sublane-aligned row count whose block fits the VMEM budget."""
    rows = block_budget_bytes // max(1, lane_width * dtype_bytes)
    rows = max(8, rows)
    if rows >= S:
        # Whole problem fits one block.  If S allows, split in two so the
        # "parallel" grid axis has >=2 steps (pipelining / v7x dual TensorCore).
        if S >= 16 and (S // 2) % 8 == 0:
            return S // 2
        return S
    return max(8, (rows // 8) * 8)   # multiple of 8 -> valid sublane block


def make_positional_encoding(d_model: int, max_len: int = 5000) -> jnp.ndarray:
    """Reference pe buffer, identical to the PyTorch __init__ construction.

    Returns array of shape (max_len, 1, d_model), float32.
    """
    position = jnp.arange(max_len, dtype=jnp.float32)[:, None]            # (max_len, 1)
    div_term = jnp.exp(
        jnp.arange(0, d_model, 2, dtype=jnp.float32)
        * (-math.log(10000.0) / d_model)
    )                                                                     # (d_model/2,)
    angles = position * div_term                                          # (max_len, d/2)
    pe = jnp.stack([jnp.sin(angles), jnp.cos(angles)], axis=-1)           # (max_len, d/2, 2)
    pe = pe.reshape(max_len, d_model)
    return pe[:, None, :]                                                 # (max_len, 1, d)


def positional_encoding_forward(x: jnp.ndarray, *, block_s: int | None = None,
                                donate_x: bool = False) -> jnp.ndarray:
    """x: (S, B, D). Returns x + pe[:S] (pe generated in-kernel). No dropout,
    matching the reference module's forward (dropout member is never applied)."""
    S, B, D = x.shape
    assert D % 2 == 0, "d_model must be even (same restriction as the PyTorch module)"
    lane_width = B * D

    x2 = x.reshape(S, lane_width)          # free, lane-dense 2-D view
    if block_s is None:
        block_s = _choose_block_s(S, lane_width, x2.dtype.itemsize)
    block_s = min(block_s, S)
    if block_s < S:
        assert block_s % 8 == 0, "partial blocks must be sublane (8) aligned"

    grid = (pl.cdiv(S, block_s),)          # ragged last block handled by Pallas
    kernel = functools.partial(_pe_add_kernel, d_model=D)

    out2 = pl.pallas_call(
        kernel,
        out_shape=jax.ShapeDtypeStruct((S, lane_width), x.dtype),
        grid_spec=pl.GridSpec(
            grid=grid,
            in_specs=[pl.BlockSpec((block_s, lane_width), lambda i: (i, 0))],
            out_specs=pl.BlockSpec((block_s, lane_width), lambda i: (i, 0)),
        ),
        compiler_params=pltpu.CompilerParams(
            dimension_semantics=("parallel",),
            vmem_limit_bytes=32 * 1024 * 1024,   # covers v5e's 16 MiB default; OK on v7x
        ),
        # Alias x -> out only when the caller no longer needs x (saves the output
        # HBM allocation); off by default so eager callers keep x valid.
        input_output_aliases=({0: 0} if donate_x else {}),
    )(x2)
    return out2.reshape(S, B, D)


if __name__ == "__main__":
    # Small shapes consistent with the module: seq=8, batch=2, d_model=32.
    S, B, D = 8, 2, 32
    MAX_LEN = 64  # forward only ever uses pe[:S]

    key = jax.random.PRNGKey(0)
    x = jax.random.normal(key, (S, B, D), dtype=jnp.float32)

    out = positional_encoding_forward(x)
    out = jax.block_until_ready(out)

    # Reference check against the PyTorch-style precomputed pe buffer.
    pe = make_positional_encoding(D, MAX_LEN)
    ref = x + pe[:S]
    assert out.shape == (S, B, D)
    err = float(jnp.max(jnp.abs(out - ref)))
    assert err < 1e-4, f"max abs err {err}"

    print("KERNEL_OK")
</pallas_src>

<mosaic_0001>
module attributes {stable_mosaic.version = 11 : i64} {
  func.func @_pe_add_kernel(%arg0: i32, %arg1: memref<8x64xf32, #tpu.memory_space<vmem>>, %arg2: memref<8x64xf32, #tpu.memory_space<vmem>>) attributes {dimension_semantics = [#tpu.dimension_semantics<parallel>], iteration_bounds = array<i64: 1>, scalar_prefetch = 0 : i64, scratch_operands = 0 : i64, tpu.core_type = #tpu.core_type<tc>, window_params = [{transform_indices = @transform_0, window_bounds = array<i64: 8, 64>}, {transform_indices = @transform_1, window_bounds = array<i64: 8, 64>}]} {
    %0 = tpu.iota {dimensions = array<i32: 1>} : vector<1x64xi32>
    %c32_i32 = arith.constant 32 : i32
    %c0_i32 = arith.constant 0 : i32
    %1 = arith.cmpi eq, %c32_i32, %c0_i32 : i32
    %c1_i32 = arith.constant 1 : i32
    %2 = arith.select %1, %c1_i32, %c32_i32 : i32
    %3 = vector.broadcast %2 : i32 to vector<1x64xi32>
    %4 = arith.remsi %0, %3 : vector<1x64xi32>
    %c0_i32_0 = arith.constant 0 : i32
    %5 = vector.broadcast %c0_i32_0 : i32 to vector<1x64xi32>
    %6 = arith.cmpi ne, %4, %5 : vector<1x64xi32>
    %c0_i32_1 = arith.constant 0 : i32
    %7 = vector.broadcast %c0_i32_1 : i32 to vector<1x64xi32>
    %8 = arith.cmpi slt, %4, %7 : vector<1x64xi32>
    %c0_i32_2 = arith.constant 0 : i32
    %9 = arith.cmpi slt, %2, %c0_i32_2 : i32
    %10 = vector.broadcast %9 : i1 to vector<1x64xi1>
    %11 = vector.broadcast %10 : vector<1x64xi1> to vector<1x64xi1>
    %12 = arith.xori %8, %11 : vector<1x64xi1>
    %13 = arith.andi %12, %6 : vector<1x64xi1>
    %14 = vector.broadcast %2 : i32 to vector<1x64xi32>
    %15 = arith.addi %4, %14 : vector<1x64xi32>
    %16 = arith.select %13, %15, %4 : vector<1x64xi1>, vector<1x64xi32>
    %c1_i32_3 = arith.constant 1 : i32
    %17 = vector.broadcast %c1_i32_3 : i32 to vector<1x64xi32>
    %18 = arith.andi %16, %17 : vector<1x64xi32>
    %19 = arith.subi %16, %18 : vector<1x64xi32>
    %20 = arith.sitofp %19 : vector<1x64xi32> to vector<1x64xf32>
    %cst = arith.constant -0.287823141 : f32
    %21 = vector.broadcast %cst : f32 to vector<1x64xf32>
    %22 = arith.mulf %20, %21 : vector<1x64xf32>
    %23 = math.exp %22 : vector<1x64xf32>
    %c1_i32_4 = arith.constant 1 : i32
    %24 = vector.broadcast %c1_i32_4 : i32 to vector<1x64xi32>
    %25 = arith.andi %16, %24 : vector<1x64xi32>
    %c0_i32_5 = arith.constant 0 : i32
    %26 = vector.broadcast %c0_i32_5 : i32 to vector<1x64xi32>
    %27 = arith.cmpi eq, %25, %26 : vector<1x64xi32>
    %28 = tpu.iota {dimensions = array<i32: 0>} : vector<8x1xi32>
    %c8_i32 = arith.constant 8 : i32
    %29 = arith.muli %arg0, %c8_i32 : i32
    %30 = vector.broadcast %29 : i32 to vector<8x1xi32>
    %31 = arith.addi %28, %30 : vector<8x1xi32>
    %32 = arith.sitofp %31 : vector<8x1xi32> to vector<8x1xf32>
    %33 = vector.broadcast %32 : vector<8x1xf32> to vector<8x64xf32>
    %34 = vector.broadcast %23 : vector<1x64xf32> to vector<8x64xf32>
    %35 = arith.mulf %33, %34 : vector<8x64xf32>
    %36 = math.sin %35 : vector<8x64xf32>
    %37 = math.cos %35 : vector<8x64xf32>
    %38 = vector.shape_cast %27 : vector<1x64xi1> to vector<1x64xi1>
    %39 = vector.broadcast %38 : vector<1x64xi1> to vector<8x64xi1>
    %40 = arith.select %39, %36, %37 : vector<8x64xi1>, vector<8x64xf32>
    %c0 = arith.constant 0 : index
    %c0_6 = arith.constant 0 : index
    %41 = vector.load %arg1[%c0, %c0_6] : memref<8x64xf32, #tpu.memory_space<vmem>>, vector<8x64xf32>
    %42 = arith.addf %41, %40 : vector<8x64xf32>
    %c0_7 = arith.constant 0 : index
    %c0_8 = arith.constant 0 : index
    %43 = vector.load %arg2[%c0_7, %c0_8] : memref<8x64xf32, #tpu.memory_space<vmem>>, vector<8x64xf32>
    tpu.vector_store %arg2[%c0_7, %c0_8], %42 {strides = array<i32>} : memref<8x64xf32, #tpu.memory_space<vmem>>, vector<8x64xf32>,
    return
  }
  func.func @transform_0(%arg0: i32) -> (i32, i32) {
    %c0_i32 = arith.constant 0 : i32
    %c0_i32_0 = arith.constant 0 : i32
    return %arg0, %c0_i32 : i32, i32
  }
  func.func @transform_1(%arg0: i32) -> (i32, i32) {
    %c0_i32 = arith.constant 0 : i32
    %c0_i32_0 = arith.constant 0 : i32
    return %arg0, %c0_i32 : i32, i32
  }
}

</mosaic_0001>

<bundles_post_ra>
// kernel: tpu_custom_call.1
= control target key start
LH: loop header
LB: loop body
LE: loop exit
PB: predicated region body
PF: predicated region fallthrough
CT: control target
= control target key end

     0   :  { %6 = vsyncpa [#allocation3], 0  ;;  %s397_s0 = inlined_call_operand.hbm [shape: f32[8,64], index: 0, kind: input, shape index: {}]   ;;  %s398_s1 = inlined_call_operand.hbm [shape: f32[8,64], index: 1, kind: output, shape index: {}]  }
   0x1   :  { %7 = vsyncpa [#allocation4], 0  ;;  %s348_s6 = smov [#allocation2]  }
   0x2   :  { %s14_s7 = sshll.u32 %s348_s6, 4  ;;  %s15_s7 = int_to_ptr.vmem [resolvable:$true] %s14_s7 }
   0x3   :  { %s312_s8 = scalar_lea.vmem %s15_s7, 128  ;;  %p317_p1 = scmp.lt.s32.totalorder %s15_s7, %s15_s7 }
   0x4   :  { %p313_p0 = scmp.ne.s32.totalorder %s15_s7, %s312_s8  ;;  %p318_p2 = scmp.lt.s32.totalorder %s312_s8, %s312_s8 }
   0x6   :  { %p319_p3 = por %p318_p2, %p317_p1 }
   0x8   :  { %p320_p4 = pnand %p319_p3, %p313_p0 }
   0xa   :  { %323 = shalt.err (!%p320_p4)
}
   0xb   :  { %17 = dma.hbm_to_vmem [thread:$0]  %s397_s0, 128, %s15_s7, [#allocation3]  }
   0xc   :  { %344 = dma.done.wait [#allocation3], 128  }
   0xd   :  { %345 = vsyncadd [#allocation3], 4294967168  ;;  %v21_v0 = vlaneseq  ;;  %v349_v23 = vmov 683565275   ;;  %v350_v25 = vmov 2475754826  }
   0xe   :  { %v351_v27 = vmov 2131351028   ;;  %v352_v29 = vmov 2102212464   ;;  %v353_v31 = vmov 920167782  }
   0xf   :  { %v22_v1 = vand.u32 127, %v21_v0  ;;  %v43_v8 = vshrl.u32 %v21_v0, 7  ;;  %v354_v38 = vmov 1326507024   ;;  %s355_s0 = smov [#allocation5]  }
  0x10   :  { %s269_s11 = sshll.u32 %s355_s0, 4  ;;  %s270_s11 = int_to_ptr.vmem [resolvable:$true] %s269_s11 }
  0x11   :  { %v27_v2 = vand.u32 31, %v22_v1  ;;  %v47_v9 = vcvt.s32.f32 %v43_v8  ;;  %s324_s12 = scalar_lea.vmem %s270_s11, 128  ;;  %p329_p6 = scmp.lt.s32.totalorder %s270_s11, %s270_s11 }
  0x12   :  { %p325_p5 = scmp.ne.s32.totalorder %s270_s11, %s324_s12  ;;  %p330_p7 = scmp.lt.s32.totalorder %s324_s12, %s324_s12 }
  0x13   :  { %v369_v3 = vand.u32 1, %v27_v2 }
  0x14   :  { %p331_p8 = por %p330_p7, %p329_p6 }
  0x15   :  { %v36_v4 = vsub.s32 %v27_v2, %v369_v3 }
  0x16   :  { %p332_p9 = pnand %p331_p8, %p325_p5 }
  0x17   :  { %v37_v5 = vcvt.s32.f32 %v36_v4 }
  0x19   :  { %v38_v6 = vmul.f32 -0.28782314, %v37_v5 }
  0x1b   :  { %v39_v7 = vmul.f32 1.442695, %v38_v6 }
  0x1d   :  { %298 = vpow2.f32 %v39_v7 }
  0x2a   :  { %v299_v10 = vpop.eup %298 }
  0x2b   :  { %v372_v11 = vmul.f32 %v299_v10, %v47_v9 }
  0x2d   :  { %v52_v12 = vand.u32 2139095040, %v372_v11  ;;  %v49_v14 = vand.u32 2147483647, %v372_v11  ;;  %vm51_vm7 = vcmp.lt.s32.totalorder %v372_v11, 0  ;;  %vm141_vm15 = vweird.f32 %v372_v11 }
  0x2f   :  { %v53_v13 = vshrl.u32 %v52_v12, 23  ;;  %v56_v17 = vand.u32 8388607, %v49_v14  ;;  %vm50_vm8 = vcmp.le.f32.partialorder %v49_v14, 0.7853982 }
  0x31   :  { %v278_v15 = vadd.s32 4294967169, %v53_v13  ;;  %v57_v20 = vor.u32 8388608, %v56_v17 }
  0x33   :  { %v59_v16 = vadd.s32 1, %v278_v15  ;;  %v97_v40 = vshll.u32 %v57_v20, 8 }
  0x35   :  { %vm60_vm0 = vcmp.gt.s32.totalorder %v59_v16, 0 }
  0x36   :  { %v61_v18 = vsel %vm60_vm0, %v59_v16, 0  ;;  %vm41_vm0 = vcmp.eq.s32.totalorder %v369_v3, 0 }
  0x37   :  { %v63_v19 = vand.u32 31, %v61_v18  ;;  %v62_v21 = vshrl.u32 %v61_v18, 5 }
  0x39   :  { %v64_v22 = vsub.s32 32, %v63_v19  ;;  %v66_v24 = vshll.u32 %v349_v23, %v63_v19  ;;  %v69_v26 = vshll.u32 %v350_v25, %v63_v19  ;;  %v72_v28 = vshll.u32 %v351_v27, %v63_v19 }
  0x3a   :  { %v75_v30 = vshll.u32 %v352_v29, %v63_v19  ;;  %v78_v32 = vshll.u32 %v353_v31, %v63_v19  ;;  %vm81_vm1 = vcmp.lt.s32.totalorder %v62_v21, 1  ;;  %vm84_vm2 = vcmp.lt.s32.totalorder %v62_v21, 4 }
  0x3b   :  { %v65_v33 = vshrl.u32 %v349_v23, %v64_v22  ;;  %v67_v34 = vshrl.u32 %v350_v25, %v64_v22  ;;  %v70_v35 = vshrl.u32 %v351_v27, %v64_v22  ;;  %v73_v36 = vshrl.u32 %v352_v29, %v64_v22 }
  0x3c   :  { %v76_v37 = vshrl.u32 %v353_v31, %v64_v22  ;;  %v79_v39 = vshrl.u32 %v354_v38, %v64_v22  ;;  %vm82_vm3 = vcmp.lt.s32.totalorder %v62_v21, 2  ;;  %vm83_vm4 = vcmp.lt.s32.totalorder %v62_v21, 3 }
  0x3d   :  { %v68_v41 = vor.u32 %v67_v34, %v66_v24  ;;  %v71_v42 = vor.u32 %v70_v35, %v69_v26  ;;  %v74_v43 = vor.u32 %v73_v36, %v72_v28 }
  0x3e   :  { %v77_v44 = vor.u32 %v76_v37, %v75_v30  ;;  %v80_v45 = vor.u32 %v79_v39, %v78_v32 }
  0x3f   :  { %v85_v46 = vsel %vm81_vm1, %v65_v33, %v68_v41  ;;  %v86_v47 = vsel %vm84_vm2, %v74_v43, 2102212464  ;;  %v89_v48 = vsel %vm81_vm1, %v68_v41, %v71_v42  ;;  %v93_v49 = vsel %vm81_vm1, %v71_v42, %v74_v43 }
  0x40   :  { %v87_v50 = vsel %vm83_vm4, %v71_v42, %v86_v47  ;;  %v90_v51 = vsel %vm84_vm2, %v77_v44, 920167782  ;;  %v94_v52 = vsel %vm84_vm2, %v80_v45, 1326507024  ;;  %vm261_vm1 = vcmask 523264  }
  0x41   :  { %v91_v53 = vsel %vm83_vm4, %v74_v43, %v90_v51  ;;  %v95_v54 = vsel %vm83_vm4, %v77_v44, %v94_v52  ;;  %v88_v55 = vsel %vm82_vm3, %v85_v46, %v87_v50  ;;  %v259_v44 = vld [vmem:[#allocation2] sm:$0xff] }
  0x42   :  { %v92_v56 = vsel %vm82_vm3, %v89_v48, %v91_v53  ;;  %v96_v57 = vsel %vm82_vm3, %v93_v49, %v95_v54  ;;  %v104_v62 = vmul.u32 %v97_v40, %v88_v55 }
  0x43   :  { %v378_v58 = vmul.u32.u64.low %v97_v40, %v96_v57  ;;  %v379_v59 = vmul.u32.u64.high %v97_v40, %v96_v57, %v378_v58  ;;  %v381_v60 = vmul.u32.u64.low %v97_v40, %v92_v56  ;;  %v382_v61 = vmul.u32.u64.high %v97_v40, %v92_v56, %v381_v60 }
  0x45   :  { %vm106_vm5 = vc.u32 %v379_v59, %v381_v60  ;;  %v107_v63 = vadd.s32 1, %v382_v61  ;;  %v105_v12 = vadd.s32 %v381_v60, %v379_v59 }
  0x47   :  { %v108_v0 = vsel %vm106_vm5, %v107_v63, %v382_v61 }
  0x48   :  { %v109_v1 = vadd.s32 %v108_v0, %v104_v62 }
  0x4a   :  { %v110_v2 = vadd.s32 536870912, %v109_v1 }
  0x4c   :  { %v111_v4 = vshrl.u32 %v110_v2, 30 }
  0x4e   :  { %v112_v5 = vshll.u32 %v111_v4, 30  ;;  %v135_v26 = vsub.s32 4, %v111_v4 }
  0x50   :  { %v113_v6 = vsub.s32 %v109_v1, %v112_v5  ;;  %v136_v29 = vsel %vm51_vm7, %v135_v26, %v111_v4 }
  0x51   :  { %v138_v31 = vsel %vm50_vm8, 0, %v136_v29 }
  0x52   :  { %v115_v7 = vsub.s32 0, %v113_v6  ;;  %v142_v32 = vadd.s32 3, %v138_v31  ;;  %v246_v34 = vand.u32 3, %v138_v31 }
  0x54   :  { %v279_v8 = vmin.u32 %v115_v7, %v113_v6  ;;  %v143_v33 = vand.u32 3, %v142_v32  ;;  %vm251_vm10 = vcmp.eq.s32.totalorder %v246_v34, 2  ;;  %vm248_vm12 = vcmp.eq.s32.totalorder %v246_v34, 0 }
  0x55   :  { %vm247_vm14 = vcmp.lt.s32.totalorder %v246_v34, 2 }
  0x56   :  { %v117_v9 = vclz %v279_v8  ;;  %vm148_vm9 = vcmp.eq.s32.totalorder %v143_v33, 2  ;;  %vm145_vm11 = vcmp.eq.s32.totalorder %v143_v33, 0  ;;  %vm144_vm13 = vcmp.lt.s32.totalorder %v143_v33, 2 }
  0x58   :  { %v280_v10 = vadd.s32 4294967294, %v117_v9 }
  0x5a   :  { %vm281_vm6 = vcmp.lt.s32.totalorder %v280_v10, 0 }
  0x5b   :  { %v120_v13 = vsel %vm281_vm6, 0, %v280_v10 }
  0x5c   :  { %v121_v15 = vsub.s32 32, %v120_v13  ;;  %v122_v16 = vshll.u32 %v113_v6, %v120_v13  ;;  %v125_v17 = vsub.s32 4294967266, %v120_v13 }
  0x5e   :  { %v123_v18 = vshrl.u32 %v105_v12, %v121_v15  ;;  %v126_v19 = vadd.s32 127, %v125_v17 }
  0x60   :  { %v124_v20 = vor.u32 %v123_v18, %v122_v16  ;;  %v127_v21 = vshll.u32 %v126_v19, 23 }
  0x62   :  { %v128_v22 = vor.u32 4788187, %v127_v21  ;;  %v131_v23 = vcvt.s32.f32 %v124_v20 }
  0x64   :  { %v129_v24 = vand.u32 2147483647, %v128_v22 }
  0x66   :  { %v132_v25 = vmul.f32 %v131_v23, %v129_v24 }
  0x68   :  { %v133_v27 = vxor.u32 2147483648, %v132_v25 }
  0x6a   :  { %v134_v28 = vsel %vm51_vm7, %v133_v27, %v132_v25 }
  0x6b   :  { %v137_v30 = vsel %vm50_vm8, %v372_v11, %v134_v28 }
  0x6c   :  { %300 = vcosq.f32 %v137_v30 }
  0x6d   :  { %302 = vsinq.f32 %v137_v30 }
  0x79   :  { %v301_v35 = vpop.eup %300 }
  0x7a   :  { %v303_v36 = vpop.eup %302  ;;  %v149_v37 = vxor.u32 2147483648, %v301_v35 }
  0x7b   :  { %v146_v14 = vxor.u32 2147483648, %v303_v36 }
  0x7c   :  { %v150_v38 = vsel %vm148_vm9, %v149_v37, %v303_v36  ;;  %v253_v39 = vsel %vm251_vm10, %v149_v37, %v303_v36 }
  0x7d   :  { %v147_v40 = vsel %vm145_vm11, %v301_v35, %v146_v14  ;;  %v250_v41 = vsel %vm248_vm12, %v301_v35, %v146_v14 }
  0x7e   :  { %v151_v42 = vsel %vm144_vm13, %v147_v40, %v150_v38  ;;  %v254_v43 = vsel %vm247_vm14, %v250_v41, %v253_v39 }
  0x7f   :  { %v152_v45 = vsel %vm141_vm15, nan, %v151_v42  ;;  %v255_v46 = vsel %vm141_vm15, nan, %v254_v43 }
  0x80   :  { %v258_v47 = vsel %vm41_vm0, %v152_v45, %v255_v46 }
  0x81   :  { %v260_v48 = vadd.f32 %v259_v44, %v258_v47 }
  0x83   :  { %262 = vst.msk [vmem:[#allocation5] sm:$0xff] %vm261_vm1, %v260_v48 }
  0x84   :  { %335 = shalt.err (!%p332_p9)
}
  0x85   :  { %272 = dma.vmem_to_hbm [thread:$0]  %s270_s11, 128, %s398_s1, [#allocation4]  }
  0x86   :  { %346 = dma.done.wait [#allocation4], 128  }
  0x87   :  { %347 = vsyncadd [#allocation4], 4294967168 }
  0x88   :  { %276 = vsyncpa [#allocation3], 1 }
  0x89   :  { %277 = vsyncpa [#allocation4], 1 }

</bundles_post_ra>
